<compile_context>
chip_gen: v7x
topology: tpu7x:2x2x1
jax: 0.10.0
libtpu: 0.0.40
codegen_flags: <defaults>
</compile_context>

<pallas_src>
import inspect

import jax
import jax.numpy as jnp
from jax.experimental import pallas as pl
from jax.experimental.pallas import tpu as pltpu


def _round_up(a, m):
    return (a + m - 1) // m * m


try:
    _HAS_PIPELINE_MODE = (
        hasattr(pl, "Buffered")
        and "pipeline_mode" in inspect.signature(pl.BlockSpec).parameters)
except Exception:  # pragma: no cover - very old/new API shapes
    _HAS_PIPELINE_MODE = False


def _block_spec(shape, index_map, nbuf=None):
    """BlockSpec; nbuf=1 single-buffers grid-invariant operands when supported."""
    if nbuf is not None and _HAS_PIPELINE_MODE:
        return pl.BlockSpec(shape, index_map, pipeline_mode=pl.Buffered(nbuf))
    return pl.BlockSpec(shape, index_map)


def _cheb_weight_first_kernel(x_ref, adj_ref, w_ref, b_ref, o_ref, z_ref):
    """Used when C_out_p <= C_in_p.

    Grid: (batch blocks ["parallel"], node-column strips ["arbitrary"]).
      x_ref  : (TB, C_in_p, Npad)       resident across the strip axis
      adj_ref: (K*Npad, NSTRIP)         current column strip of the stacked stack
      w_ref  : (K, C_out_p, C_in_p)     transposed weights, grid-invariant
      b_ref  : (C_out_p, NSTRIP)        f32 lane-dense bias slab, grid-invariant
      o_ref  : (TB, C_out_p, NSTRIP)
      z_ref  : (TB*C_out_p, K*Npad)     scratch: weight-contracted activations
    """
    TB, C_in_p, Npad = x_ref.shape
    K, C_out_p, _ = w_ref.shape
    nstrip = adj_ref.shape[-1]

    @pl.when(pl.program_id(1) == 0)
    def _():
        # z[(b,o), (k,n)] = sum_i W[k,i,o] * x[b,i,n] : tiny vs the adjacency
        # matmul; computed once per batch block, reused by every node strip.
        x = x_ref[...]
        for k in range(K):
            wk = jnp.broadcast_to(w_ref[k][None], (TB, C_out_p, C_in_p))
            zk = jnp.einsum('boi,bin->bon', wk, x,
                            preferred_element_type=jnp.float32)
            z_ref[:, k * Npad:(k + 1) * Npad] = (
                zk.reshape(TB * C_out_p, Npad).astype(z_ref.dtype))

    # Single fused MXU matmul: (TB*C_out_p, K*Npad) @ (K*Npad, NSTRIP), f32 acc.
    out = jnp.dot(z_ref[...], adj_ref[...], preferred_element_type=jnp.float32)
    out = out.reshape(TB, C_out_p, nstrip) + b_ref[...][None]
    o_ref[...] = out.astype(o_ref.dtype)


def _cheb_adj_first_kernel(x_ref, adj_ref, w_ref, b_ref, o_ref):
    """Used when C_out_p > C_in_p: K adjacency matmuls at M = TB*C_in_p rows,
    each followed immediately by its weight contraction (no concat scratch),
    f32 accumulation of the output."""
    TB, C_in_p, Npad = x_ref.shape
    K, C_out_p, _ = w_ref.shape
    nstrip = adj_ref.shape[-1]

    x2 = x_ref[...].reshape(TB * C_in_p, Npad)
    acc = jnp.zeros((TB, C_out_p, nstrip), jnp.float32)
    for k in range(K):
        yk = jnp.dot(x2, adj_ref[k * Npad:(k + 1) * Npad, :],
                     preferred_element_type=jnp.float32)
        yk = yk.reshape(TB, C_in_p, nstrip).astype(x2.dtype)
        wk = jnp.broadcast_to(w_ref[k][None], (TB, C_out_p, C_in_p))
        acc = acc + jnp.einsum('boi,bin->bon', wk, yk,
                               preferred_element_type=jnp.float32)
    o_ref[...] = (acc + b_ref[...][None]).astype(o_ref.dtype)


def cheb_filter_block(x, adj_mx, weights, bias, *, compute_dtype=jnp.bfloat16):
    """x: [B, C_in, N, T], adj_mx: [K, N, N], weights: [K, C_in, C_out],
    bias: [C_out]  ->  [B, C_out, N, T]  (matches the PyTorch module).

    compute_dtype: dtype of x / adjacency / weights fed to the MXU (f32
    accumulation and f32 bias/output regardless)."""
    B, C_in, N, T = x.shape
    K, _, C_out = weights.shape
    BT = B * T

    C_in_p = _round_up(C_in, 8)
    C_out_p = _round_up(C_out, 8)
    Npad = _round_up(N, 128)
    weight_first = C_out_p <= C_in_p
    item = jnp.dtype(compute_dtype).itemsize
    out_item = jnp.dtype(x.dtype).itemsize

    # ---- generation-aware VMEM budget (v7x: 64 MiB/TC, v5e/v6e: 128 MiB) ----
    try:
        vmem_cap = int(pltpu.get_tpu_info().vmem_capacity_bytes)
    except Exception:
        vmem_cap = 64 * 1024 * 1024  # conservative (v7x) fallback
    budget = int(vmem_cap * 0.75)

    def vmem_est(tb, nstrip):
        nbuf_adj = 1 if (nstrip == Npad and _HAS_PIPELINE_MODE) else 2
        est = (2 * tb * C_in_p * Npad * item             # x block (double-buffered)
               + nbuf_adj * K * Npad * nstrip * item     # adjacency strip
               + K * C_out_p * C_in_p * item             # weights
               + C_out_p * nstrip * 4                    # bias slab
               + 2 * tb * C_out_p * nstrip * out_item)   # out block (double-buffered)
        if weight_first:
            est += tb * C_out_p * K * Npad * item        # z scratch
        else:
            est += tb * (C_out_p + C_in_p) * nstrip * 4  # f32 acc + per-k temp
        return est

    # ---- tile selection: big-M first (TB ~ 512 LHS rows), then widest strip ----
    strip_cands = [d for d in range(Npad, 127, -128) if Npad % d == 0]
    tb_max = min(_round_up(max(8, 512 // C_in_p), 8), _round_up(BT, 8))
    tb_cands, t = [], tb_max
    while True:
        t8 = max(8, _round_up(t, 8))
        if not tb_cands or t8 < tb_cands[-1]:
            tb_cands.append(t8)
        if t8 <= 8:
            break
        t = t8 // 2
    TB = NSTRIP = None
    for tcand in tb_cands:
        for scand in strip_cands:
            if vmem_est(tcand, scand) <= budget:
                TB, NSTRIP = tcand, scand
                break
        if TB is not None:
            break
    if TB is None:
        # TODO(synk): for graphs where even a (TB=8, 128-lane) tile overflows the
        # VMEM budget, additionally tile the contraction (adjacency-row) dim.
        TB, NSTRIP = 8, 128

    BT_p = _round_up(BT, TB)
    num_blocks = BT_p // TB      # >= 2 on real workloads so both v7x cores get work
    num_strips = Npad // NSTRIP

    # ---------------- wrapper-side layout glue (plain XLA) ----------------
    x_r = jnp.transpose(x, (0, 3, 1, 2)).reshape(BT, C_in, N)
    x_p = jnp.pad(x_r, ((0, BT_p - BT), (0, C_in_p - C_in), (0, Npad - N))
                  ).astype(compute_dtype)                          # (BT_p, C_in_p, Npad)
    adj_p = jnp.pad(adj_mx, ((0, 0), (0, Npad - N), (0, Npad - N))
                    ).reshape(K * Npad, Npad).astype(compute_dtype)  # stacked rows
    w_p = jnp.pad(weights, ((0, 0), (0, C_in_p - C_in), (0, C_out_p - C_out)))
    w_t = jnp.transpose(w_p, (0, 2, 1)).astype(compute_dtype)       # (K, C_out_p, C_in_p)
    b_slab = jnp.broadcast_to(
        jnp.pad(bias, (0, C_out_p - C_out)).astype(jnp.float32)[:, None],
        (C_out_p, NSTRIP))                                          # lane-dense, f32

    # ---------------- cost estimate / compiler params ----------------
    small_flops = 2 * BT_p * K * C_out_p * C_in_p * Npad
    adj_flops = 2 * BT_p * K * (C_out_p if weight_first else C_in_p) * Npad * Npad
    bytes_accessed = int(x_p.size * item + num_blocks * adj_p.size * item
                         + w_t.size * item + b_slab.size * 4
                         + BT_p * C_out_p * Npad * out_item)
    est = vmem_est(TB, NSTRIP)
    vmem_limit = min(vmem_cap - 8 * 1024 * 1024,
                     max(32 * 1024 * 1024, int(est * 1.25)))
    cparams = pltpu.CompilerParams(
        dimension_semantics=("parallel", "arbitrary"),
        vmem_limit_bytes=vmem_limit)

    in_specs = [
        pl.BlockSpec((TB, C_in_p, Npad), lambda b, s: (b, 0, 0)),
        _block_spec((K * Npad, NSTRIP), lambda b, s: (0, s),
                    nbuf=1 if num_strips == 1 else None),
        _block_spec((K, C_out_p, C_in_p), lambda b, s: (0, 0, 0), nbuf=1),
        _block_spec((C_out_p, NSTRIP), lambda b, s: (0, 0), nbuf=1),
    ]
    out_spec = pl.BlockSpec((TB, C_out_p, NSTRIP), lambda b, s: (b, 0, s))
    if weight_first:
        kernel = _cheb_weight_first_kernel
        scratch = [pltpu.VMEM((TB * C_out_p, K * Npad), compute_dtype)]
    else:
        kernel = _cheb_adj_first_kernel
        scratch = []

    out_p = pl.pallas_call(
        kernel,
        out_shape=jax.ShapeDtypeStruct((BT_p, C_out_p, Npad), x.dtype),
        grid_spec=pltpu.PrefetchScalarGridSpec(
            num_scalar_prefetch=0,
            grid=(num_blocks, num_strips),
            in_specs=in_specs,
            out_specs=out_spec,
            scratch_shapes=scratch),
        compiler_params=cparams,
        cost_estimate=pl.CostEstimate(flops=adj_flops + small_flops,
                                      transcendentals=0,
                                      bytes_accessed=bytes_accessed),
    )(x_p, adj_p, w_t, b_slab)

    out = out_p[:BT, :C_out, :N].reshape(B, T, C_out, N)
    # Final permute only matches the PyTorch module's [B, C_out, N, T] layout.
    return jnp.transpose(out, (0, 2, 3, 1))


def cheb_filter_ref(x, adj_mx, weights, bias):
    """Pure-JAX reference mirroring the PyTorch forward exactly (f32)."""
    B, C_in, N, T = x.shape
    K, _, C_out = weights.shape
    x_r = jnp.transpose(x, (0, 3, 1, 2)).reshape(B * T, C_in, N)
    out = jnp.zeros((B * T, C_out, N), jnp.float32)
    for k in range(K):
        xk = jnp.matmul(x_r, adj_mx[k])                    # [BT, C_in, N]
        out = out + jnp.einsum('bim,io->bom', xk, weights[k])
    out = out + bias.reshape(1, C_out, 1)
    return jnp.transpose(out.reshape(B, T, C_out, N), (0, 2, 3, 1))


if __name__ == "__main__":
    def _run_case(tag, B, C_in, C_out, N, T, K, compute_dtype, atol, rtol):
        key = jax.random.PRNGKey(0)
        kx, kadj, kw, kb = jax.random.split(key, 4)
        x = jax.random.normal(kx, (B, C_in, N, T), dtype=jnp.float32)
        adj_mx = jax.random.normal(kadj, (K, N, N), dtype=jnp.float32)
        limit = (6.0 / (C_in * C_out + K * C_out)) ** 0.5
        weights = jax.random.uniform(kw, (K, C_in, C_out), jnp.float32,
                                     minval=-limit, maxval=limit)
        bias = 0.1 * jax.random.normal(kb, (C_out,), dtype=jnp.float32)

        out = cheb_filter_block(x, adj_mx, weights, bias,
                                compute_dtype=compute_dtype)
        out = jax.block_until_ready(out)
        ref = cheb_filter_ref(x, adj_mx, weights, bias)
        assert out.shape == (B, C_out, N, T), (tag, out.shape)
        err = float(jnp.max(jnp.abs(out - ref)))
        assert jnp.allclose(out, ref, atol=atol, rtol=rtol), (tag, err)

    # Weight-first path (C_out_p <= C_in_p), f32 compute: tight check.
    _run_case("wf_f32", B=2, C_in=4, C_out=8, N=16, T=8, K=3,
              compute_dtype=jnp.float32, atol=5e-4, rtol=5e-4)
    # Adjacency-first path (C_out_p > C_in_p), non-multiple-of-128 node count.
    _run_case("af_f32", B=2, C_in=4, C_out=32, N=20, T=4, K=2,
              compute_dtype=jnp.float32, atol=5e-4, rtol=5e-4)
    # Default bf16 compute path (f32 accumulation): looser tolerance.
    _run_case("wf_bf16", B=2, C_in=4, C_out=8, N=16, T=8, K=3,
              compute_dtype=jnp.bfloat16, atol=2e-1, rtol=5e-2)

    print("KERNEL_OK")
</pallas_src>

<mosaic_0001>
module attributes {stable_mosaic.version = 11 : i64} {
  func.func @_cheb_weight_first_kernel(%arg0: i32, %arg1: i32, %arg2: memref<16x8x128xf32, #tpu.memory_space<vmem>>, %arg3: memref<384x128xf32, #tpu.memory_space<vmem>>, %arg4: memref<3x8x8xf32, #tpu.memory_space<vmem>>, %arg5: memref<8x128xf32, #tpu.memory_space<vmem>>, %arg6: memref<16x8x128xf32, #tpu.memory_space<vmem>>, %arg7: memref<128x384xf32, #tpu.memory_space<vmem>>) attributes {dimension_semantics = [#tpu.dimension_semantics<parallel>, #tpu.dimension_semantics<arbitrary>], iteration_bounds = array<i64: 1, 1>, scalar_prefetch = 0 : i64, scratch_operands = 1 : i64, tpu.core_type = #tpu.core_type<tc>, window_params = [{transform_indices = @transform_0, window_bounds = array<i64: 16, 8, 128>}, {pipeline_mode = #tpu.pipeline_mode<synchronous>, transform_indices = @transform_1, window_bounds = array<i64: 384, 128>}, {pipeline_mode = #tpu.pipeline_mode<synchronous>, transform_indices = @transform_2, window_bounds = array<i64: 3, 8, 8>}, {pipeline_mode = #tpu.pipeline_mode<synchronous>, transform_indices = @transform_3, window_bounds = array<i64: 8, 128>}, {transform_indices = @transform_4, window_bounds = array<i64: 16, 8, 128>}]} {
    %c0_i32 = arith.constant 0 : i32
    %0 = arith.cmpi eq, %arg1, %c0_i32 : i32
    %1 = arith.extui %0 : i1 to i32
    %c0_i32_0 = arith.constant 0 : i32
    %2 = arith.cmpi ne, %1, %c0_i32_0 : i32
    scf.if %2 {
      %c0_9 = arith.constant 0 : index
      %c0_10 = arith.constant 0 : index
      %c0_11 = arith.constant 0 : index
      %12 = vector.load %arg2[%c0_9, %c0_10, %c0_11] : memref<16x8x128xf32, #tpu.memory_space<vmem>>, vector<16x8x128xf32>
      %c0_12 = arith.constant 0 : index
      %c0_13 = arith.constant 0 : index
      %c0_14 = arith.constant 0 : index
      %13 = vector.load %arg4[%c0_12, %c0_13, %c0_14] : memref<3x8x8xf32, #tpu.memory_space<vmem>>, vector<1x8x8xf32>
      %14 = vector.shape_cast %13 : vector<1x8x8xf32> to vector<8x8xf32>
      %15 = vector.shape_cast %14 : vector<8x8xf32> to vector<1x8x8xf32>
      %16 = vector.shape_cast %15 : vector<1x8x8xf32> to vector<1x8x8xf32>
      %17 = vector.broadcast %16 : vector<1x8x8xf32> to vector<16x8x8xf32>
      "tpu.trace_start"() <{level = 10 : i32, message = "boi,bin->bon"}> : () -> ()
      %cst_15 = arith.constant dense<0.000000e+00> : vector<16x8x128xf32>
      %18 = tpu.matmul %17, %12, %cst_15 {dimension_numbers = #tpu.dot_dimension_numbers<[2], [1], [1], [2], [0, 0, 0, 1, 1, 2], [0], [0]>} : vector<16x8x8xf32>, vector<16x8x128xf32>, vector<16x8x128xf32> -> vector<16x8x128xf32>
      "tpu.trace_stop"() : () -> ()
      %19 = vector.shape_cast %18 : vector<16x8x128xf32> to vector<128x128xf32>
      %c0_16 = arith.constant 0 : index
      %c0_17 = arith.constant 0 : index
      %20 = vector.load %arg7[%c0_16, %c0_17] : memref<128x384xf32, #tpu.memory_space<vmem>>, vector<128x128xf32>
      tpu.vector_store %arg7[%c0_16, %c0_17], %19 {strides = array<i32>} : memref<128x384xf32, #tpu.memory_space<vmem>>, vector<128x128xf32>,
      %c1 = arith.constant 1 : index
      %c0_18 = arith.constant 0 : index
      %c0_19 = arith.constant 0 : index
      %21 = vector.load %arg4[%c1, %c0_18, %c0_19] : memref<3x8x8xf32, #tpu.memory_space<vmem>>, vector<1x8x8xf32>
      %22 = vector.shape_cast %21 : vector<1x8x8xf32> to vector<8x8xf32>
      %23 = vector.shape_cast %22 : vector<8x8xf32> to vector<1x8x8xf32>
      %24 = vector.shape_cast %23 : vector<1x8x8xf32> to vector<1x8x8xf32>
      %25 = vector.broadcast %24 : vector<1x8x8xf32> to vector<16x8x8xf32>
      "tpu.trace_start"() <{level = 10 : i32, message = "boi,bin->bon"}> : () -> ()
      %cst_20 = arith.constant dense<0.000000e+00> : vector<16x8x128xf32>
      %26 = tpu.matmul %25, %12, %cst_20 {dimension_numbers = #tpu.dot_dimension_numbers<[2], [1], [1], [2], [0, 0, 0, 1, 1, 2], [0], [0]>} : vector<16x8x8xf32>, vector<16x8x128xf32>, vector<16x8x128xf32> -> vector<16x8x128xf32>
      "tpu.trace_stop"() : () -> ()
      %27 = vector.shape_cast %26 : vector<16x8x128xf32> to vector<128x128xf32>
      %c0_21 = arith.constant 0 : index
      %c128 = arith.constant 128 : index
      %28 = vector.load %arg7[%c0_21, %c128] : memref<128x384xf32, #tpu.memory_space<vmem>>, vector<128x128xf32>
      tpu.vector_store %arg7[%c0_21, %c128], %27 {strides = array<i32>} : memref<128x384xf32, #tpu.memory_space<vmem>>, vector<128x128xf32>,
      %c2 = arith.constant 2 : index
      %c0_22 = arith.constant 0 : index
      %c0_23 = arith.constant 0 : index
      %29 = vector.load %arg4[%c2, %c0_22, %c0_23] : memref<3x8x8xf32, #tpu.memory_space<vmem>>, vector<1x8x8xf32>
      %30 = vector.shape_cast %29 : vector<1x8x8xf32> to vector<8x8xf32>
      %31 = vector.shape_cast %30 : vector<8x8xf32> to vector<1x8x8xf32>
      %32 = vector.shape_cast %31 : vector<1x8x8xf32> to vector<1x8x8xf32>
      %33 = vector.broadcast %32 : vector<1x8x8xf32> to vector<16x8x8xf32>
      "tpu.trace_start"() <{level = 10 : i32, message = "boi,bin->bon"}> : () -> ()
      %cst_24 = arith.constant dense<0.000000e+00> : vector<16x8x128xf32>
      %34 = tpu.matmul %33, %12, %cst_24 {dimension_numbers = #tpu.dot_dimension_numbers<[2], [1], [1], [2], [0, 0, 0, 1, 1, 2], [0], [0]>} : vector<16x8x8xf32>, vector<16x8x128xf32>, vector<16x8x128xf32> -> vector<16x8x128xf32>
      "tpu.trace_stop"() : () -> ()
      %35 = vector.shape_cast %34 : vector<16x8x128xf32> to vector<128x128xf32>
      %c0_25 = arith.constant 0 : index
      %c256 = arith.constant 256 : index
      %36 = vector.load %arg7[%c0_25, %c256] : memref<128x384xf32, #tpu.memory_space<vmem>>, vector<128x128xf32>
      tpu.vector_store %arg7[%c0_25, %c256], %35 {strides = array<i32>} : memref<128x384xf32, #tpu.memory_space<vmem>>, vector<128x128xf32>,
    } else {
    }
    %c0 = arith.constant 0 : index
    %c0_1 = arith.constant 0 : index
    %3 = vector.load %arg7[%c0, %c0_1] : memref<128x384xf32, #tpu.memory_space<vmem>>, vector<128x384xf32>
    %c0_2 = arith.constant 0 : index
    %c0_3 = arith.constant 0 : index
    %4 = vector.load %arg3[%c0_2, %c0_3] : memref<384x128xf32, #tpu.memory_space<vmem>>, vector<384x128xf32>
    %cst = arith.constant dense<0.000000e+00> : vector<128x128xf32>
    %5 = tpu.matmul %3, %4, %cst {dimension_numbers = #tpu.dot_dimension_numbers<[1], [0], [0], [1], [0, 0, 1, 1], [], []>} : vector<128x384xf32>, vector<384x128xf32>, vector<128x128xf32> -> vector<128x128xf32>
    %6 = vector.shape_cast %5 : vector<128x128xf32> to vector<16x8x128xf32>
    %c0_4 = arith.constant 0 : index
    %c0_5 = arith.constant 0 : index
    %7 = vector.load %arg5[%c0_4, %c0_5] : memref<8x128xf32, #tpu.memory_space<vmem>>, vector<8x128xf32>
    %8 = vector.shape_cast %7 : vector<8x128xf32> to vector<1x8x128xf32>
    %9 = vector.broadcast %8 : vector<1x8x128xf32> to vector<16x8x128xf32>
    %10 = arith.addf %6, %9 : vector<16x8x128xf32>
    %c0_6 = arith.constant 0 : index
    %c0_7 = arith.constant 0 : index
    %c0_8 = arith.constant 0 : index
    %11 = vector.load %arg6[%c0_6, %c0_7, %c0_8] : memref<16x8x128xf32, #tpu.memory_space<vmem>>, vector<16x8x128xf32>
    tpu.vector_store %arg6[%c0_6, %c0_7, %c0_8], %10 {strides = array<i32>} : memref<16x8x128xf32, #tpu.memory_space<vmem>>, vector<16x8x128xf32>,
    return
  }
  func.func @transform_0(%arg0: i32, %arg1: i32) -> (i32, i32, i32) {
    %c0_i32 = arith.constant 0 : i32
    %c0_i32_0 = arith.constant 0 : i32
    %c0_i32_1 = arith.constant 0 : i32
    return %arg0, %c0_i32, %c0_i32_0 : i32, i32, i32
  }
  func.func @transform_1(%arg0: i32, %arg1: i32) -> (i32, i32) {
    %c0_i32 = arith.constant 0 : i32
    %c0_i32_0 = arith.constant 0 : i32
    return %c0_i32, %arg1 : i32, i32
  }
  func.func @transform_2(%arg0: i32, %arg1: i32) -> (i32, i32, i32) {
    %c0_i32 = arith.constant 0 : i32
    %c0_i32_0 = arith.constant 0 : i32
    %c0_i32_1 = arith.constant 0 : i32
    %c0_i32_2 = arith.constant 0 : i32
    return %c0_i32, %c0_i32_0, %c0_i32_1 : i32, i32, i32
  }
  func.func @transform_3(%arg0: i32, %arg1: i32) -> (i32, i32) {
    %c0_i32 = arith.constant 0 : i32
    %c0_i32_0 = arith.constant 0 : i32
    %c0_i32_1 = arith.constant 0 : i32
    return %c0_i32, %c0_i32_0 : i32, i32
  }
  func.func @transform_4(%arg0: i32, %arg1: i32) -> (i32, i32, i32) {
    %c0_i32 = arith.constant 0 : i32
    %c0_i32_0 = arith.constant 0 : i32
    return %arg0, %c0_i32, %arg1 : i32, i32, i32
  }
}

</mosaic_0001>

<bundles_post_ra>
// kernel: tpu_custom_call.1
= control target key start
LH: loop header
LB: loop body
LE: loop exit
PB: predicated region body
PF: predicated region fallthrough
CT: control target
= control target key end

     0   :  { %9 = vsyncpa [#allocation4], 0  ;;  %s5137_s0 = inlined_call_operand.hbm [shape: f32[16,8,128], index: 0, kind: input, shape index: {}]   ;;  %s5138_s1 = inlined_call_operand.hbm [shape: f32[384,128], index: 1, kind: input, shape index: {}]   ;;  %s5139_s2 = inlined_call_operand.hbm [shape: f32[3,8,8], index: 2, kind: input, shape index: {}]   ;;  %s5140_s3 = inlined_call_operand.vmem [shape: f32[8,128], index: 3, kind: input, shape index: {}]   ;;  %s5141_s4 = inlined_call_operand.hbm [shape: f32[16,8,128], index: 4, kind: output, shape index: {}]  }
   0x1   :  { %10 = vsyncpa [#allocation7], 0 }
   0x2   :  { %11 = vsyncpa [#allocation5], 0  ;;  %s4657_s15 = smov [#allocation6]   ;;  %s4658_s17 = smov [#allocation3]  }
   0x3   :  { %s29_s16 = sshll.u32 %s4657_s15, 4  ;;  %s17_s18 = sshll.u32 %s4658_s17, 4  ;;  %s30_s16 = int_to_ptr.vmem [resolvable:$true] %s29_s16  ;;  %s4690_s18 = int_to_ptr.vmem [resolvable:$true] %s17_s18 }
   0x4   :  { %s4563_s21 = scalar_lea.hbm %s5138_s1, 6144 }
   0x5   :  { %p4564_p0 = scmp.ne.s32.totalorder %s5138_s1, %s4563_s21  ;;  %p4567_p1 = scmp.lt.u32.totalorder %s4563_s21, %s5138_s1 }
   0x7   :  { %p4569_p2 = pnand %p4567_p1, %p4564_p0 }
   0x9   :  { %4572 = shalt.err (!%p4569_p2)
}
   0xa   :  { %s4573_s26 = scalar_lea.vmem %s30_s16, 6144  ;;  %p4578_p4 = scmp.lt.s32.totalorder %s30_s16, %s30_s16 }
   0xb   :  { %p4574_p3 = scmp.ne.s32.totalorder %s30_s16, %s4573_s26  ;;  %p4579_p5 = scmp.lt.s32.totalorder %s4573_s26, %s4573_s26 }
   0xd   :  { %p4580_p6 = por %p4579_p5, %p4578_p4 }
   0xf   :  { %p4581_p7 = pnand %p4580_p6, %p4574_p3 }
  0x11   :  { %4584 = shalt.err (!%p4581_p7)
}
  0x12   :  { %s4659_s27 = smov 128   ;;  %s4660_s28 = smov 8  }
  0x13   :  { %35 = dma.hbm_to_vmem [thread:$0]  %s5138_s1, 6144, %s30_s16, [#allocation7], %s4659_s27, %s4659_s27, %s4660_s28  }
  0x14   :  { %s4585_s7 = scalar_lea.hbm %s5137_s0, 2048 }
  0x15   :  { %p4586_p8 = scmp.ne.s32.totalorder %s5137_s0, %s4585_s7  ;;  %p4589_p9 = scmp.lt.u32.totalorder %s4585_s7, %s5137_s0 }
  0x17   :  { %p4591_p10 = pnand %p4589_p9, %p4586_p8 }
  0x19   :  { %4594 = shalt.err (!%p4591_p10)
}
  0x1a   :  { %s4595_s12 = scalar_lea.vmem %s4690_s18, 2048  ;;  %p4600_p12 = scmp.lt.s32.totalorder %s4690_s18, %s4690_s18 }
  0x1b   :  { %p4596_p11 = scmp.ne.s32.totalorder %s4690_s18, %s4595_s12  ;;  %p4601_p13 = scmp.lt.s32.totalorder %s4595_s12, %s4595_s12 }
  0x1d   :  { %p4602_p0 = por %p4601_p13, %p4600_p12 }
  0x1f   :  { %p4603_p1 = pnand %p4602_p0, %p4596_p11 }
  0x21   :  { %4606 = shalt.err (!%p4603_p1)
}
  0x22   :  { %23 = dma.hbm_to_vmem [thread:$0]  %s5137_s0, 2048, %s4690_s18, [#allocation4], %s4659_s27, %s4659_s27, %s4660_s28  }
  0x23   :  { %s4661_s14 = smov [#allocation8]   ;;  %s4607_s19 = scalar_lea.hbm %s5139_s2, 384 }
  0x24   :  { %s41_s15 = sshll.u32 %s4661_s14, 4  ;;  %p4608_p2 = scmp.ne.s32.totalorder %s5139_s2, %s4607_s19  ;;  %s42_s15 = int_to_ptr.vmem [resolvable:$true] %s41_s15 }
  0x25   :  { %p4611_p3 = scmp.lt.u32.totalorder %s4607_s19, %s5139_s2 }
  0x27   :  { %p4613_p4 = pnand %p4611_p3, %p4608_p2 }
  0x29   :  { %4616 = shalt.err (!%p4613_p4)
}
  0x2a   :  { %s4617_s24 = scalar_lea.vmem %s42_s15, 384  ;;  %p4622_p6 = scmp.lt.s32.totalorder %s42_s15, %s42_s15 }
  0x2b   :  { %p4618_p5 = scmp.ne.s32.totalorder %s42_s15, %s4617_s24  ;;  %p4623_p7 = scmp.lt.s32.totalorder %s4617_s24, %s4617_s24 }
  0x2d   :  { %p4624_p8 = por %p4623_p7, %p4622_p6 }
  0x2f   :  { %p4625_p9 = pnand %p4624_p8, %p4618_p5 }
  0x31   :  { %4628 = shalt.err (!%p4625_p9)
}
  0x32   :  { %47 = dma.hbm_to_vmem [thread:$0]  %s5139_s2, 384, %s42_s15, [#allocation7], %s4659_s27, %s4659_s27, %s4660_s28  }
  0x33   :  { %4651 = dma.done.wait [#allocation4], 2048  }
  0x34   :  { %4652 = vsyncadd [#allocation4], 4294965248 }
  0x35   :  { %4653 = dma.done.wait [#allocation7], 6528  }
  0x36   :  { %4654 = vsyncadd [#allocation7], 4294960768  ;;  %v4662_v0 = vmov 0.0   ;;  %vm4663_vm0 = vmmov 0   ;;  %vm80_vm1 = vcmask 64512   ;;  %v4748_v1 = vld [vmem:[#allocation3] sm:$0xff] }
  0x37   :  { %4195 = vmatprep.subr.mxu1 %v4662_v0  ;;  %4235 = vmatprep.subr.mxu0 %v4662_v0  ;;  %v4750_v2 = vld [vmem:[#allocation3 + $0x40] sm:$0xff]  ;;  %v4756_v4 = vld [vmem:[#allocation3 + $0x8] sm:$0xff]  ;;  %v4761_v5 = vld [vmem:[#allocation3 + $0x50] sm:$0xff] }
  0x38   :  { %4197 = vmatprep.mubr.msk.f32.mxu1 %vm4663_vm0, %v4662_v0  ;;  %4237 = vmatprep.mubr.msk.f32.mxu0 %vm4663_vm0, %v4662_v0  ;;  %v4752_v3 = vld [vmem:[#allocation8] sm:$0xff]  ;;  %v4769_v6 = vld [vmem:[#allocation3 + $0x10] sm:$0xff]  ;;  %v4785_v8 = vld [vmem:[#allocation3 + $0x18] sm:$0xff] }
  0x39   :  { %4196 = vmatpush3.msra.mxu1 %v4748_v1  ;;  %4236 = vmatpush3.msra.mxu0 %v4750_v2  ;;  %v4777_v7 = vld [vmem:[#allocation3 + $0x60] sm:$0xff]  ;;  %v4793_v9 = vld [vmem:[#allocation3 + $0x70] sm:$0xff]  ;;  %v4815_v11 = vld [vmem:[#allocation8 + $0x8] sm:$0xff] }
  0x3a   :  { %4198 = vmatmul.mubr.msk.f32.vlgmr.msra.gmra.mrb[0].mxu1 %vm80_vm1, %v4752_v3  ;;  %4200 = vmatprep.subr.mxu1 %v4662_v0  ;;  %v4801_v10 = vld [vmem:[#allocation3 + $0x20] sm:$0xff]  ;;  %v4817_v12 = vld [vmem:[#allocation3 + $0x28] sm:$0xff]  ;;  %v4831_v13 = vld [vmem:[#allocation3 + $0x30] sm:$0xff] }
  0x3b   :  { %4238 = vmatmul.mubr.msk.f32.vlgmr.msra.gmra.mrb[0].mxu0 %vm80_vm1, %v4752_v3  ;;  %4201 = vmatpush3.msra.mxu1 %v4756_v4  ;;  %v4843_v14 = vld [vmem:[#allocation3 + $0x38] sm:$0xff]  ;;  %v4857_v15 = vld [vmem:[#allocation3 + $0x48] sm:$0xff]  ;;  %v4930_v19 = vld [vmem:[#allocation8 + $0x10] sm:$0xff] }
  0x3c   :  { %4245 = vmatprep.subr.mxu0 %v4662_v0  ;;  %4202 = vmatprep.mubr.msk.f32.mxu1 %vm4663_vm0, %v4662_v0  ;;  %v4871_v16 = vld [vmem:[#allocation3 + $0x58] sm:$0xff]  ;;  %v4885_v17 = vld [vmem:[#allocation3 + $0x68] sm:$0xff]  ;;  %v3566_v20 = vld [vmem:[#allocation6 + $0x80] sm:$0xff] }
  0x3d   :  { %4246 = vmatpush3.msra.mxu0 %v4761_v5  ;;  %4247 = vmatprep.mubr.msk.f32.mxu0 %vm4663_vm0, %v4662_v0  ;;  %v4899_v18 = vld [vmem:[#allocation3 + $0x78] sm:$0xff]  ;;  %v3567_v21 = vld [vmem:[#allocation6 + $0x88] sm:$0xff]  ;;  %v3550_v22 = vld [vmem:[#allocation6] sm:$0xff] }
  0x3e   :  { %4203 = vmatmul.mubr.msk.f32.vlgmr.msra.gmra.mrb[2].mxu1 %vm80_vm1, %v4752_v3  ;;  %4205 = vmatprep.subr.mxu1 %v4662_v0  ;;  %v3551_v23 = vld [vmem:[#allocation6 + $0x8] sm:$0xff]  ;;  %v4491_v24 = vpack.c.bf16 %v3567_v21, %v3566_v20  ;;  %v3568_v25 = vld [vmem:[#allocation6 + $0x90] sm:$0xff]  ;;  %v3569_v26 = vld [vmem:[#allocation6 + $0x98] sm:$0xff] }
  0x3f   :  { %4248 = vmatmul.mubr.msk.f32.vlgmr.msra.gmra.mrb[2].mxu0 %vm80_vm1, %v4752_v3  ;;  %4206 = vmatpush3.msra.mxu1 %v4769_v6  ;;  %v4493_v27 = vpack.c.bf16 %v3551_v23, %v3550_v22  ;;  %v3552_v28 = vld [vmem:[#allocation6 + $0x10] sm:$0xff]  ;;  %v3553_v29 = vld [vmem:[#allocation6 + $0x18] sm:$0xff]  ;;  %v4495_v30 = vpack.c.bf16 %v3569_v26, %v3568_v25  ;;  %v3570_v31 = vld [vmem:[#allocation6 + $0xa0] sm:$0xff] }
  0x40   :  { %4255 = vmatprep.subr.mxu0 %v4662_v0  ;;  %4207 = vmatprep.mubr.msk.f32.mxu1 %vm4663_vm0, %v4662_v0  ;;  %v3571_v32 = vld [vmem:[#allocation6 + $0xa8] sm:$0xff]  ;;  %v4497_v33 = vpack.c.bf16 %v3553_v29, %v3552_v28  ;;  %v3554_v34 = vld [vmem:[#allocation6 + $0x20] sm:$0xff]  ;;  %v3572_v37 = vld [vmem:[#allocation6 + $0xb0] sm:$0xff] }
  0x41   :  { %4256 = vmatpush3.msra.mxu0 %v4777_v7  ;;  %4257 = vmatprep.mubr.msk.f32.mxu0 %vm4663_vm0, %v4662_v0  ;;  %v3555_v35 = vld [vmem:[#allocation6 + $0x28] sm:$0xff]  ;;  %v4499_v36 = vpack.c.bf16 %v3571_v32, %v3570_v31  ;;  %v3573_v38 = vld [vmem:[#allocation6 + $0xb8] sm:$0xff]  ;;  %v3556_v40 = vld [vmem:[#allocation6 + $0x30] sm:$0xff] }
  0x42   :  { %4208 = vmatmul.mubr.msk.f32.vlgmr.msra.gmra.mrb[4].mxu1 %vm80_vm1, %v4752_v3  ;;  %4210 = vmatprep.subr.mxu1 %v4662_v0  ;;  %v4501_v39 = vpack.c.bf16 %v3555_v35, %v3554_v34  ;;  %v3557_v41 = vld [vmem:[#allocation6 + $0x38] sm:$0xff]  ;;  %v4503_v42 = vpack.c.bf16 %v3573_v38, %v3572_v37  ;;  %v3574_v43 = vld [vmem:[#allocation6 + $0xc0] sm:$0xff]  ;;  %v3575_v44 = vld [vmem:[#allocation6 + $0xc8] sm:$0xff] }
  0x43   :  { %4258 = vmatmul.mubr.msk.f32.vlgmr.msra.gmra.mrb[4].mxu0 %vm80_vm1, %v4752_v3  ;;  %4211 = vmatpush3.msra.mxu1 %v4785_v8  ;;  %v4505_v45 = vpack.c.bf16 %v3557_v41, %v3556_v40  ;;  %v3558_v46 = vld [vmem:[#allocation6 + $0x40] sm:$0xff]  ;;  %v3559_v47 = vld [vmem:[#allocation6 + $0x48] sm:$0xff]  ;;  %v4507_v48 = vpack.c.bf16 %v3575_v44, %v3574_v43  ;;  %v3576_v49 = vld [vmem:[#allocation6 + $0xd0] sm:$0xff] }
  0x44   :  { %4265 = vmatprep.subr.mxu0 %v4662_v0  ;;  %4212 = vmatprep.mubr.msk.f32.mxu1 %vm4663_vm0, %v4662_v0  ;;  %v3577_v50 = vld [vmem:[#allocation6 + $0xd8] sm:$0xff]  ;;  %v4509_v51 = vpack.c.bf16 %v3559_v47, %v3558_v46  ;;  %v3560_v52 = vld [vmem:[#allocation6 + $0x50] sm:$0xff]  ;;  %v3578_v55 = vld [vmem:[#allocation6 + $0xe0] sm:$0xff] }
  0x45   :  { %4266 = vmatpush3.msra.mxu0 %v4793_v9  ;;  %4267 = vmatprep.mubr.msk.f32.mxu0 %vm4663_vm0, %v4662_v0  ;;  %v3561_v53 = vld [vmem:[#allocation6 + $0x58] sm:$0xff]  ;;  %v4511_v54 = vpack.c.bf16 %v3577_v50, %v3576_v49  ;;  %v3579_v56 = vld [vmem:[#allocation6 + $0xe8] sm:$0xff]  ;;  %v3562_v58 = vld [vmem:[#allocation6 + $0x60] sm:$0xff] }
  0x46   :  { %4213 = vmatmul.mubr.msk.f32.vlgmr.msra.gmra.mrb[6].mxu1 %vm80_vm1, %v4752_v3  ;;  %4215 = vmatprep.subr.mxu1 %v4662_v0  ;;  %v4513_v57 = vpack.c.bf16 %v3561_v53, %v3560_v52  ;;  %v3563_v59 = vld [vmem:[#allocation6 + $0x68] sm:$0xff]  ;;  %v4515_v60 = vpack.c.bf16 %v3579_v56, %v3578_v55  ;;  %v3580_v61 = vld [vmem:[#allocation6 + $0xf0] sm:$0xff]  ;;  %v3581_v62 = vld [vmem:[#allocation6 + $0xf8] sm:$0xff] }
  0x47   :  { %4268 = vmatmul.mubr.msk.f32.vlgmr.msra.gmra.mrb[6].mxu0 %vm80_vm1, %v4752_v3  ;;  %4216 = vmatpush3.msra.mxu1 %v4801_v10  ;;  %v4517_v63 = vpack.c.bf16 %v3563_v59, %v3562_v58  ;;  %v3593_v20 = vld [vmem:[#allocation6 + $0x158] sm:$0xff]  ;;  %v3594_v22 = vld [vmem:[#allocation6 + $0x160] sm:$0xff]  ;;  %v3595_v23 = vld [vmem:[#allocation6 + $0x168] sm:$0xff] }
  0x48   :  { %4275 = vmatprep.subr.mxu0 %v4662_v0  ;;  %4217 = vmatprep.mubr.msk.f32.mxu1 %vm4663_vm0, %v4662_v0  ;;  %v3596_v25 = vld [vmem:[#allocation6 + $0x170] sm:$0xff]  ;;  %v3597_v26 = vld [vmem:[#allocation6 + $0x178] sm:$0xff] }
  0x49   :  { %4276 = vmatpush3.msra.mxu0 %v4748_v1  ;;  %4277 = vmatprep.mubr.msk.f32.mxu0 %vm4663_vm0, %v4662_v0 }
  0x4a   :  { %4218 = vmatmul.mubr.msk.f32.vlgmr.msra.gmra.mrb[8].mxu1 %vm80_vm1, %v4752_v3  ;;  %4220 = vmatprep.subr.mxu1 %v4662_v0 }
  0x4b   :  { %4278 = vmatmul.mubr.msk.f32.vlgmr.msra.gmra.mrb[8].mxu0 %vm80_vm1, %v4815_v11  ;;  %4221 = vmatpush3.msra.mxu1 %v4817_v12 }
  0x4c   :  { %4222 = vmatprep.mubr.msk.f32.mxu1 %vm4663_vm0, %v4662_v0  ;;  %4225 = vmatprep.subr.mxu1 %v4662_v0 }
  0x4d   :  { %4285 = vmatprep.subr.mxu0 %v4662_v0  ;;  %4287 = vmatprep.mubr.msk.f32.mxu0 %vm4663_vm0, %v4662_v0 }
  0x4e   :  { %4223 = vmatmul.mubr.msk.f32.vlgmr.msra.gmra.mrb[10].mxu1 %vm80_vm1, %v4752_v3  ;;  %4286 = vmatpush3.msra.mxu0 %v4769_v6 }
  0x4f   :  { %4226 = vmatpush3.msra.mxu1 %v4831_v13  ;;  %4227 = vmatprep.mubr.msk.f32.mxu1 %vm4663_vm0, %v4662_v0 }
  0x50   :  { %4230 = vmatprep.subr.mxu1 %v4662_v0  ;;  %4288 = vmatmul.mubr.msk.f32.vlgmr.msra.gmra.mrb[10].mxu0 %vm80_vm1, %v4815_v11 }
  0x51   :  { %4295 = vmatprep.subr.mxu0 %v4662_v0  ;;  %4297 = vmatprep.mubr.msk.f32.mxu0 %vm4663_vm0, %v4662_v0 }
  0x52   :  { %4228 = vmatmul.mubr.msk.f32.vlgmr.msra.gmra.mrb[12].mxu1 %vm80_vm1, %v4752_v3  ;;  %4296 = vmatpush3.msra.mxu0 %v4801_v10 }
  0x53   :  { %4231 = vmatpush3.msra.mxu1 %v4843_v14  ;;  %4232 = vmatprep.mubr.msk.f32.mxu1 %vm4663_vm0, %v4662_v0 }
  0x54   :  { %4240 = vmatprep.subr.mxu1 %v4662_v0  ;;  %4298 = vmatmul.mubr.msk.f32.vlgmr.msra.gmra.mrb[12].mxu0 %vm80_vm1, %v4815_v11 }
  0x55   :  { %4305 = vmatprep.subr.mxu0 %v4662_v0  ;;  %4307 = vmatprep.mubr.msk.f32.mxu0 %vm4663_vm0, %v4662_v0 }
  0x56   :  { %4233 = vmatmul.mubr.msk.f32.vlgmr.msra.gmra.mrb[14].mxu1 %vm80_vm1, %v4752_v3  ;;  %4306 = vmatpush3.msra.mxu0 %v4831_v13 }
  0x57   :  { %4241 = vmatpush3.msra.mxu1 %v4857_v15  ;;  %4242 = vmatprep.mubr.msk.f32.mxu1 %vm4663_vm0, %v4662_v0 }
  0x58   :  { %4250 = vmatprep.subr.mxu1 %v4662_v0  ;;  %4308 = vmatmul.mubr.msk.f32.vlgmr.msra.gmra.mrb[14].mxu0 %vm80_vm1, %v4815_v11 }
  0x59   :  { %4315 = vmatprep.subr.mxu0 %v4662_v0  ;;  %4317 = vmatprep.mubr.msk.f32.mxu0 %vm4663_vm0, %v4662_v0 }
  0x5a   :  { %4243 = vmatmul.mubr.msk.f32.vlgmr.msra.gmra.mrb[16].mxu1 %vm80_vm1, %v4752_v3  ;;  %4316 = vmatpush3.msra.mxu0 %v4750_v2 }
  0x5b   :  { %4251 = vmatpush3.msra.mxu1 %v4871_v16  ;;  %4252 = vmatprep.mubr.msk.f32.mxu1 %vm4663_vm0, %v4662_v0 }
  0x5c   :  { %4260 = vmatprep.subr.mxu1 %v4662_v0  ;;  %4318 = vmatmul.mubr.msk.f32.vlgmr.msra.gmra.mrb[16].mxu0 %vm80_vm1, %v4815_v11 }
  0x5d   :  { %4325 = vmatprep.subr.mxu0 %v4662_v0  ;;  %4327 = vmatprep.mubr.msk.f32.mxu0 %vm4663_vm0, %v4662_v0 }
  0x5e   :  { %4253 = vmatmul.mubr.msk.f32.vlgmr.msra.gmra.mrb[18].mxu1 %vm80_vm1, %v4752_v3  ;;  %4326 = vmatpush3.msra.mxu0 %v4761_v5 }
  0x5f   :  { %4261 = vmatpush3.msra.mxu1 %v4885_v17  ;;  %4262 = vmatprep.mubr.msk.f32.mxu1 %vm4663_vm0, %v4662_v0 }
  0x60   :  { %4270 = vmatprep.subr.mxu1 %v4662_v0  ;;  %4328 = vmatmul.mubr.msk.f32.vlgmr.msra.gmra.mrb[18].mxu0 %vm80_vm1, %v4815_v11 }
  0x61   :  { %4335 = vmatprep.subr.mxu0 %v4662_v0  ;;  %4337 = vmatprep.mubr.msk.f32.mxu0 %vm4663_vm0, %v4662_v0 }
  0x62   :  { %4263 = vmatmul.mubr.msk.f32.vlgmr.msra.gmra.mrb[20].mxu1 %vm80_vm1, %v4752_v3  ;;  %4336 = vmatpush3.msra.mxu0 %v4777_v7 }
  0x63   :  { %4271 = vmatpush3.msra.mxu1 %v4899_v18  ;;  %4272 = vmatprep.mubr.msk.f32.mxu1 %vm4663_vm0, %v4662_v0 }
  0x64   :  { %4280 = vmatprep.subr.mxu1 %v4662_v0  ;;  %4338 = vmatmul.mubr.msk.f32.vlgmr.msra.gmra.mrb[20].mxu0 %vm80_vm1, %v4815_v11 }
  0x65   :  { %4345 = vmatprep.subr.mxu0 %v4662_v0  ;;  %4347 = vmatprep.mubr.msk.f32.mxu0 %vm4663_vm0, %v4662_v0 }
  0x66   :  { %4273 = vmatmul.mubr.msk.f32.vlgmr.msra.gmra.mrb[22].mxu1 %vm80_vm1, %v4752_v3  ;;  %4346 = vmatpush3.msra.mxu0 %v4793_v9  ;;  %v4519_v3 = vpack.c.bf16 %v3581_v62, %v3580_v61 }
  0x67   :  { %4281 = vmatpush3.msra.mxu1 %v4756_v4  ;;  %4282 = vmatprep.mubr.msk.f32.mxu1 %vm4663_vm0, %v4662_v0 }
  0x68   :  { %4290 = vmatprep.subr.mxu1 %v4662_v0  ;;  %4348 = vmatmul.mubr.msk.f32.vlgmr.msra.gmra.mrb[22].mxu0 %vm80_vm1, %v4815_v11 }
  0x69   :  { %4355 = vmatprep.subr.mxu0 %v4662_v0  ;;  %4357 = vmatprep.mubr.msk.f32.mxu0 %vm4663_vm0, %v4662_v0 }
  0x6a   :  { %4283 = vmatmul.mubr.msk.f32.vlgmr.msra.gmra.mrb[24].mxu1 %vm80_vm1, %v4815_v11  ;;  %4356 = vmatpush3.msra.mxu0 %v4748_v1  ;;  %v3564_v1 = vld [vmem:[#allocation6 + $0x70] sm:$0xff] }
  0x6b   :  { %4291 = vmatpush3.msra.mxu1 %v4785_v8  ;;  %4292 = vmatprep.mubr.msk.f32.mxu1 %vm4663_vm0, %v4662_v0 }
  0x6c   :  { %4300 = vmatprep.subr.mxu1 %v4662_v0  ;;  %4358 = vmatmul.mubr.msk.f32.vlgmr.msra.gmra.mrb[24].mxu0 %vm80_vm1, %v4930_v19 }
  0x6d   :  { %4365 = vmatprep.subr.mxu0 %v4662_v0  ;;  %4367 = vmatprep.mubr.msk.f32.mxu0 %vm4663_vm0, %v4662_v0 }
  0x6e   :  { %4293 = vmatmul.mubr.msk.f32.vlgmr.msra.gmra.mrb[26].mxu1 %vm80_vm1, %v4815_v11  ;;  %4366 = vmatpush3.msra.mxu0 %v4769_v6  ;;  %v3583_v6 = vld [vmem:[#allocation6 + $0x108] sm:$0xff] }
  0x6f   :  { %4301 = vmatpush3.msra.mxu1 %v4817_v12  ;;  %4302 = vmatprep.mubr.msk.f32.mxu1 %vm4663_vm0, %v4662_v0 }
  0x70   :  { %4310 = vmatprep.subr.mxu1 %v4662_v0  ;;  %4368 = vmatmul.mubr.msk.f32.vlgmr.msra.gmra.mrb[26].mxu0 %vm80_vm1, %v4930_v19 }
  0x71   :  { %4375 = vmatprep.subr.mxu0 %v4662_v0  ;;  %4377 = vmatprep.mubr.msk.f32.mxu0 %vm4663_vm0, %v4662_v0 }
  0x72   :  { %4303 = vmatmul.mubr.msk.f32.vlgmr.msra.gmra.mrb[28].mxu1 %vm80_vm1, %v4815_v11  ;;  %4376 = vmatpush3.msra.mxu0 %v4801_v10 }
  0x73   :  { %4311 = vmatpush3.msra.mxu1 %v4843_v14  ;;  %4312 = vmatprep.mubr.msk.f32.mxu1 %vm4663_vm0, %v4662_v0 }
  0x74   :  { %4320 = vmatprep.subr.mxu1 %v4662_v0  ;;  %4378 = vmatmul.mubr.msk.f32.vlgmr.msra.gmra.mrb[28].mxu0 %vm80_vm1, %v4930_v19 }
  0x75   :  { %4385 = vmatprep.subr.mxu0 %v4662_v0  ;;  %4387 = vmatprep.mubr.msk.f32.mxu0 %vm4663_vm0, %v4662_v0 }
  0x76   :  { %4313 = vmatmul.mubr.msk.f32.vlgmr.msra.gmra.mrb[30].mxu1 %vm80_vm1, %v4815_v11  ;;  %4386 = vmatpush3.msra.mxu0 %v4831_v13 }
  0x77   :  { %4321 = vmatpush3.msra.mxu1 %v4857_v15  ;;  %4322 = vmatprep.mubr.msk.f32.mxu1 %vm4663_vm0, %v4662_v0 }
  0x78   :  { %4330 = vmatprep.subr.mxu1 %v4662_v0  ;;  %4388 = vmatmul.mubr.msk.f32.vlgmr.msra.gmra.mrb[30].mxu0 %vm80_vm1, %v4930_v19 }
  0x79   :  { %4395 = vmatprep.subr.mxu0 %v4662_v0  ;;  %4397 = vmatprep.mubr.msk.f32.mxu0 %vm4663_vm0, %v4662_v0 }
  0x7a   :  { %4323 = vmatmul.mubr.msk.f32.vlgmr.msra.gmra.mrb[32].mxu1 %vm80_vm1, %v4815_v11  ;;  %4396 = vmatpush3.msra.mxu0 %v4750_v2  ;;  %v3565_v2 = vld [vmem:[#allocation6 + $0x78] sm:$0xff] }
  0x7b   :  { %4331 = vmatpush3.msra.mxu1 %v4871_v16  ;;  %4332 = vmatprep.mubr.msk.f32.mxu1 %vm4663_vm0, %v4662_v0 }
  0x7c   :  { %4340 = vmatprep.subr.mxu1 %v4662_v0  ;;  %4398 = vmatmul.mubr.msk.f32.vlgmr.msra.gmra.mrb[32].mxu0 %vm80_vm1, %v4930_v19 }
  0x7d   :  { %4405 = vmatprep.subr.mxu0 %v4662_v0  ;;  %4407 = vmatprep.mubr.msk.f32.mxu0 %vm4663_vm0, %v4662_v0 }
  0x7e   :  { %4333 = vmatmul.mubr.msk.f32.vlgmr.msra.gmra.mrb[34].mxu1 %vm80_vm1, %v4815_v11  ;;  %4406 = vmatpush3.msra.mxu0 %v4761_v5  ;;  %v3582_v5 = vld [vmem:[#allocation6 + $0x100] sm:$0xff] }
  0x7f   :  { %4341 = vmatpush3.msra.mxu1 %v4885_v17  ;;  %4342 = vmatprep.mubr.msk.f32.mxu1 %vm4663_vm0, %v4662_v0 }
  0x80   :  { %4350 = vmatprep.subr.mxu1 %v4662_v0  ;;  %4408 = vmatmul.mubr.msk.f32.vlgmr.msra.gmra.mrb[34].mxu0 %vm80_vm1, %v4930_v19 }
  0x81   :  { %4415 = vmatprep.subr.mxu0 %v4662_v0  ;;  %4417 = vmatprep.mubr.msk.f32.mxu0 %vm4663_vm0, %v4662_v0 }
  0x82   :  { %4343 = vmatmul.mubr.msk.f32.vlgmr.msra.gmra.mrb[36].mxu1 %vm80_vm1, %v4815_v11  ;;  %4416 = vmatpush3.msra.mxu0 %v4777_v7  ;;  %v4523_v7 = vpack.c.bf16 %v3583_v6, %v3582_v5 }
  0x83   :  { %4351 = vmatpush3.msra.mxu1 %v4899_v18  ;;  %4352 = vmatprep.mubr.msk.f32.mxu1 %vm4663_vm0, %v4662_v0 }
  0x84   :  { %4360 = vmatprep.subr.mxu1 %v4662_v0  ;;  %4418 = vmatmul.mubr.msk.f32.vlgmr.msra.gmra.mrb[36].mxu0 %vm80_vm1, %v4930_v19 }
  0x85   :  { %4425 = vmatprep.subr.mxu0 %v4662_v0  ;;  %4427 = vmatprep.mubr.msk.f32.mxu0 %vm4663_vm0, %v4662_v0 }
  0x86   :  { %4353 = vmatmul.mubr.msk.f32.vlgmr.msra.gmra.mrb[38].mxu1 %vm80_vm1, %v4815_v11  ;;  %4426 = vmatpush3.msra.mxu0 %v4793_v9  ;;  %v3585_v9 = vld [vmem:[#allocation6 + $0x118] sm:$0xff]  ;;  %v3586_v11 = vld [vmem:[#allocation6 + $0x120] sm:$0xff] }
  0x87   :  { %4361 = vmatpush3.msra.mxu1 %v4756_v4  ;;  %4362 = vmatprep.mubr.msk.f32.mxu1 %vm4663_vm0, %v4662_v0  ;;  %v4521_v4 = vpack.c.bf16 %v3565_v2, %v3564_v1 }
  0x88   :  { %4370 = vmatprep.subr.mxu1 %v4662_v0  ;;  %4428 = vmatmul.mubr.msk.f32.vlgmr.msra.gmra.mrb[38].mxu0 %vm80_vm1, %v4930_v19 }
  0x89   :  { %4492 = vmatprep.subr.bf16.mxu0 %v4491_v24  ;;  %v4547_v24 = vpack.c.bf16 %v3595_v23, %v3594_v22 }
  0x8a   :  { %4363 = vmatmul.mubr.msk.f32.vlgmr.msra.gmra.mrb[40].mxu1 %vm80_vm1, %v4930_v19  ;;  %4494 = vmatpush3.bf16.msra.mxu0 %v4493_v27  ;;  %v4551_v27 = vpack.c.bf16 %v3597_v26, %v3596_v25 }
  0x8b   :  { %4371 = vmatpush3.msra.mxu1 %v4785_v8  ;;  %4372 = vmatprep.mubr.msk.f32.mxu1 %vm4663_vm0, %v4662_v0  ;;  %v3584_v8 = vld [vmem:[#allocation6 + $0x110] sm:$0xff] }
  0x8c   :  { %4380 = vmatprep.subr.mxu1 %v4662_v0  ;;  %4496 = vmatprep.subr.bf16.mxu0 %v4495_v30  ;;  %v4527_v10 = vpack.c.bf16 %v3585_v9, %v3584_v8 }
  0x8e   :  { %4373 = vmatmul.mubr.msk.f32.vlgmr.msra.gmra.mrb[42].mxu1 %vm80_vm1, %v4930_v19  ;;  %4498 = vmatpush3.bf16.msra.mxu0 %v4497_v33 }
  0x8f   :  { %4381 = vmatpush3.msra.mxu1 %v4817_v12  ;;  %4382 = vmatprep.mubr.msk.f32.mxu1 %vm4663_vm0, %v4662_v0  ;;  %v3587_v12 = vld [vmem:[#allocation6 + $0x128] sm:$0xff] }
  0x90   :  { %4390 = vmatprep.subr.mxu1 %v4662_v0  ;;  %4500 = vmatprep.subr.bf16.mxu0 %v4499_v36  ;;  %v4531_v13 = vpack.c.bf16 %v3587_v12, %v3586_v11 }
  0x92   :  { %4383 = vmatmul.mubr.msk.f32.vlgmr.msra.gmra.mrb[44].mxu1 %vm80_vm1, %v4930_v19  ;;  %4502 = vmatpush3.bf16.msra.mxu0 %v4501_v39 }
  0x93   :  { %4391 = vmatpush3.msra.mxu1 %v4843_v14  ;;  %4392 = vmatprep.mubr.msk.f32.mxu1 %vm4663_vm0, %v4662_v0  ;;  %v3589_v14 = vld [vmem:[#allocation6 + $0x138] sm:$0xff] }
  0x94   :  { %4400 = vmatprep.subr.mxu1 %v4662_v0  ;;  %4504 = vmatprep.subr.bf16.mxu0 %v4503_v42 }
  0x96   :  { %4393 = vmatmul.mubr.msk.f32.vlgmr.msra.gmra.mrb[46].mxu1 %vm80_vm1, %v4930_v19  ;;  %4506 = vmatpush3.bf16.msra.mxu0 %v4505_v45 }
  0x97   :  { %4401 = vmatpush3.msra.mxu1 %v4857_v15  ;;  %4402 = vmatprep.mubr.msk.f32.mxu1 %vm4663_vm0, %v4662_v0 }
  0x98   :  { %4410 = vmatprep.subr.mxu1 %v4662_v0  ;;  %4508 = vmatprep.subr.bf16.mxu0 %v4507_v48 }
  0x9a   :  { %4403 = vmatmul.mubr.msk.f32.vlgmr.msra.gmra.mrb[48].mxu1 %vm80_vm1, %v4930_v19  ;;  %4510 = vmatpush3.bf16.msra.mxu0 %v4509_v51 }
  0x9b   :  { %4411 = vmatpush3.msra.mxu1 %v4871_v16  ;;  %4412 = vmatprep.mubr.msk.f32.mxu1 %vm4663_vm0, %v4662_v0  ;;  %v3590_v16 = vld [vmem:[#allocation6 + $0x140] sm:$0xff] }
  0x9c   :  { %4420 = vmatprep.subr.mxu1 %v4662_v0  ;;  %4512 = vmatprep.subr.bf16.mxu0 %v4511_v54 }
  0x9e   :  { %4413 = vmatmul.mubr.msk.f32.vlgmr.msra.gmra.mrb[50].mxu1 %vm80_vm1, %v4930_v19  ;;  %4514 = vmatpush3.bf16.msra.mxu0 %v4513_v57 }
  0x9f   :  { %4421 = vmatpush3.msra.mxu1 %v4885_v17  ;;  %4422 = vmatprep.mubr.msk.f32.mxu1 %vm4663_vm0, %v4662_v0  ;;  %v3591_v17 = vld [vmem:[#allocation6 + $0x148] sm:$0xff] }
  0xa0   :  { %4430 = vmatprep.subr.mxu1 %v4662_v0  ;;  %4516 = vmatprep.subr.bf16.mxu0 %v4515_v60 }
  0xa2   :  { %4423 = vmatmul.mubr.msk.f32.vlgmr.msra.gmra.mrb[52].mxu1 %vm80_vm1, %v4930_v19  ;;  %4518 = vmatpush3.bf16.msra.mxu0 %v4517_v63 }
  0xa3   :  { %4431 = vmatpush3.msra.mxu1 %v4899_v18  ;;  %4432 = vmatprep.mubr.msk.f32.mxu1 %vm4663_vm0, %v4662_v0  ;;  %v3588_v0 = vld [vmem:[#allocation6 + $0x130] sm:$0xff]  ;;  %v4539_v18 = vpack.c.bf16 %v3591_v17, %v3590_v16 }
  0xa4   :  { %4520 = vmatprep.subr.bf16.mxu0 %v4519_v3  ;;  %4524 = vmatprep.subr.bf16.mxu1 %v4523_v7  ;;  %v4535_v15 = vpack.c.bf16 %v3589_v14, %v3588_v0 }
  0xa6   :  { %4433 = vmatmul.mubr.msk.f32.vlgmr.msra.gmra.mrb[54].mxu1 %vm80_vm1, %v4930_v19  ;;  %4522 = vmatpush3.bf16.msra.mxu0 %v4521_v4  ;;  %v3592_v19 = vld [vmem:[#allocation6 + $0x150] sm:$0xff] }
  0xa7   :  { %4526 = vmatpush3.bf16.msra.mxu1 %v4523_v7  ;;  %v4543_v21 = vpack.c.bf16 %v3593_v20, %v3592_v19 }
  0xa8   :  { %4528 = vmatprep.subr.bf16.mxu1 %v4527_v10 }
  0xab   :  { %4530 = vmatpush3.bf16.msra.mxu1 %v4527_v10 }
  0xac   :  { %4532 = vmatprep.subr.bf16.mxu1 %v4531_v13 }
  0xaf   :  { %4534 = vmatpush3.bf16.msra.mxu1 %v4531_v13 }
  0xb0   :  { %4536 = vmatprep.subr.bf16.mxu1 %v4535_v15 }
  0xb3   :  { %4538 = vmatpush3.bf16.msra.mxu1 %v4535_v15 }
  0xb4   :  { %4540 = vmatprep.subr.bf16.mxu1 %v4539_v18 }
  0xb7   :  { %4542 = vmatpush3.bf16.msra.mxu1 %v4539_v18 }
  0xb8   :  { %4544 = vmatprep.subr.bf16.mxu1 %v4543_v21 }
  0xbb   :  { %4546 = vmatpush3.bf16.msra.mxu1 %v4543_v21 }
  0xbc   :  { %4548 = vmatprep.subr.bf16.mxu1 %v4547_v24 }
  0xbf   :  { %4550 = vmatpush3.bf16.msra.mxu1 %v4547_v24 }
  0xc0   :  { %4552 = vmatprep.subr.bf16.mxu1 %v4551_v27 }
  0xc3   :  { %4554 = vmatpush3.bf16.msra.mxu1 %v4551_v27 }
 0x10d   :  { %v150_v28 = vpop.f32.mrb[0].mxu1 }
 0x10e   :  { %v4199_v29 = vpop.f32.mrb[1].mxu1  ;;  %v5068_v30 = vpop.f32.mrb[0].mxu0 }
 0x10f   :  { %v4239_v31 = vpop.f32.mrb[1].mxu0 }
 0x111   :  { %v220_v32 = vpop.f32.mrb[2].mxu1 }
 0x112   :  { %v4204_v33 = vpop.f32.mrb[3].mxu1  ;;  %v5070_v34 = vpop.f32.mrb[2].mxu0 }
 0x113   :  { %v4249_v35 = vpop.f32.mrb[3].mxu0 }
 0x115   :  { %v290_v36 = vpop.f32.mrb[4].mxu1 }
 0x116   :  { %v4209_v37 = vpop.f32.mrb[5].mxu1  ;;  %v5072_v38 = vpop.f32.mrb[4].mxu0 }
 0x117   :  { %v4259_v39 = vpop.f32.mrb[5].mxu0 }
 0x119   :  { %v360_v40 = vpop.f32.mrb[6].mxu1 }
 0x11a   :  { %v4214_v41 = vpop.f32.mrb[7].mxu1  ;;  %v5074_v42 = vpop.f32.mrb[6].mxu0 }
 0x11b   :  { %v4269_v43 = vpop.f32.mrb[7].mxu0 }
 0x11d   :  { %v430_v44 = vpop.f32.mrb[8].mxu1 }
 0x11e   :  { %v1291_v45 = vpop.f32.mrb[8].mxu0  ;;  %v4219_v46 = vpop.f32.mrb[9].mxu1 }
 0x11f   :  { %3662 = vmatprep.mubr.f32.mxu0 %v1291_v45  ;;  %v4279_v47 = vpop.f32.mrb[9].mxu0 }
 0x120   :  { %3663 = vmatmul.mubr.f32.vlgmr.msra.gmra.mrb[40].mxu0 %v150_v28 }
 0x121   :  { %v500_v48 = vpop.f32.mrb[10].mxu1 }
 0x122   :  { %v4224_v49 = vpop.f32.mrb[11].mxu1 }
 0x123   :  { %v1431_v50 = vpop.f32.mrb[10].mxu0 }
 0x124   :  { %v4289_v51 = vpop.f32.mrb[11].mxu0 }
 0x125   :  { %v570_v52 = vpop.f32.mrb[12].mxu1 }
 0x126   :  { %v4229_v53 = vpop.f32.mrb[13].mxu1 }
 0x127   :  { %v1571_v54 = vpop.f32.mrb[12].mxu0 }
 0x128   :  { %v4299_v55 = vpop.f32.mrb[13].mxu0 }
 0x129   :  { %v640_v56 = vpop.f32.mrb[14].mxu1 }
 0x12a   :  { %v4234_v57 = vpop.f32.mrb[15].mxu1 }
 0x12b   :  { %v1711_v58 = vpop.f32.mrb[14].mxu0 }
 0x12c   :  { %v4309_v59 = vpop.f32.mrb[15].mxu0 }
 0x12d   :  { %v5076_v60 = vpop.f32.mrb[16].mxu1 }
 0x12e   :  { %v4244_v61 = vpop.f32.mrb[17].mxu1 }
 0x12f   :  { %v1851_v62 = vpop.f32.mrb[16].mxu0 }
 0x130   :  { %v4319_v63 = vpop.f32.mrb[17].mxu0 }
 0x131   :  { %v5078_v1 = vpop.f32.mrb[18].mxu1 }
 0x132   :  { %v4254_v2 = vpop.f32.mrb[19].mxu1 }
 0x133   :  { %v5080_v3 = vpop.f32.mrb[18].mxu0 }
 0x134   :  { %v4329_v4 = vpop.f32.mrb[19].mxu0 }
 0x135   :  { %v5082_v5 = vpop.f32.mrb[20].mxu1 }
 0x136   :  { %v4264_v6 = vpop.f32.mrb[21].mxu1 }
 0x137   :  { %v5084_v7 = vpop.f32.mrb[20].mxu0 }
 0x138   :  { %v4339_v8 = vpop.f32.mrb[21].mxu0 }
 0x139   :  { %v5086_v9 = vpop.f32.mrb[22].mxu1 }
 0x13a   :  { %v4274_v10 = vpop.f32.mrb[23].mxu1 }
 0x13b   :  { %v5088_v11 = vpop.f32.mrb[22].mxu0 }
 0x13c   :  { %v4349_v12 = vpop.f32.mrb[23].mxu0 }
 0x13d   :  { %v1361_v13 = vpop.f32.mrb[24].mxu1 }
 0x13e   :  { %v4284_v0 = vpop.f32.mrb[25].mxu1  ;;  %3667 = vmatprep.mubr.f32.mxu0 %v1361_v13 }
 0x13f   :  { %3668 = vmatmul.mubr.f32.gmra.mrb[42].mxu0 %v220_v32  ;;  %v2432_v14 = vpop.f32.mrb[24].mxu0 }
 0x140   :  { %3672 = vmatprep.mubr.f32.mxu0 %v1431_v50  ;;  %v4359_v15 = vpop.f32.mrb[25].mxu0  ;;  %4467 = vmatprep.mubr.f32.mxu1 %v2432_v14 }
 0x141   :  { %v1501_v16 = vpop.f32.mrb[26].mxu1 }
 0x142   :  { %v4294_v17 = vpop.f32.mrb[27].mxu1 }
 0x143   :  { %3673 = vmatmul.mubr.f32.gmra.mrb[44].mxu0 %v290_v36  ;;  %v2572_v18 = vpop.f32.mrb[26].mxu0 }
 0x144   :  { %3677 = vmatprep.mubr.f32.mxu0 %v1501_v16  ;;  %v4369_v19 = vpop.f32.mrb[27].mxu0 }
 0x145   :  { %v1641_v20 = vpop.f32.mrb[28].mxu1 }
 0x146   :  { %v4304_v21 = vpop.f32.mrb[29].mxu1 }
 0x147   :  { %3678 = vmatmul.mubr.f32.gmra.mrb[46].mxu0 %v360_v40  ;;  %v2712_v22 = vpop.f32.mrb[28].mxu0 }
 0x148   :  { %3682 = vmatprep.mubr.f32.mxu0 %v1571_v54  ;;  %v4379_v23 = vpop.f32.mrb[29].mxu0 }
 0x149   :  { %v1781_v24 = vpop.f32.mrb[30].mxu1 }
 0x14a   :  { %v4314_v25 = vpop.f32.mrb[31].mxu1 }
 0x14b   :  { %3683 = vmatmul.mubr.f32.gmra.mrb[48].mxu0 %v430_v44  ;;  %v2852_v26 = vpop.f32.mrb[30].mxu0 }
 0x14c   :  { %3687 = vmatprep.mubr.f32.mxu0 %v1641_v20  ;;  %v4389_v27 = vpop.f32.mrb[31].mxu0 }
 0x14d   :  { %v1921_v28 = vpop.f32.mrb[32].mxu1 }
 0x14e   :  { %v4324_v29 = vpop.f32.mrb[33].mxu1 }
 0x14f   :  { %3688 = vmatmul.mubr.f32.gmra.mrb[50].mxu0 %v500_v48  ;;  %v2992_v31 = vpop.f32.mrb[32].mxu0 }
 0x150   :  { %3692 = vmatprep.mubr.f32.mxu0 %v1711_v58  ;;  %v4399_v32 = vpop.f32.mrb[33].mxu0 }
 0x151   :  { %v2061_v33 = vpop.f32.mrb[34].mxu1 }
 0x152   :  { %v4334_v35 = vpop.f32.mrb[35].mxu1 }
 0x153   :  { %3693 = vmatmul.mubr.f32.gmra.mrb[52].mxu0 %v570_v52  ;;  %v3132_v36 = vpop.f32.mrb[34].mxu0 }
 0x154   :  { %3697 = vmatprep.mubr.f32.mxu0 %v1781_v24  ;;  %v4409_v37 = vpop.f32.mrb[35].mxu0  ;;  %v5104_v24 = vld [vmem:[%s5140_s3] sm:$0xff]  ;;  %s4664_s3 = smov [#allocation9]  }
 0x155   :  { %v2201_v39 = vpop.f32.mrb[36].mxu1  ;;  %s3926_s26 = sshll.u32 %s4664_s3, 4  ;;  %s3927_s26 = int_to_ptr.vmem [resolvable:$true] %s3926_s26 }
 0x156   :  { %v4344_v40 = vpop.f32.mrb[37].mxu1  ;;  %s4629_s29 = scalar_lea.vmem %s3927_s26, 2048  ;;  %p4634_p11 = scmp.lt.s32.totalorder %s3927_s26, %s3927_s26 }
 0x157   :  { %3698 = vmatmul.mubr.f32.gmra.mrb[54].mxu0 %v640_v56  ;;  %v3272_v41 = vpop.f32.mrb[36].mxu0  ;;  %p4630_p10 = scmp.ne.s32.totalorder %s3927_s26, %s4629_s29  ;;  %p4635_p12 = scmp.lt.s32.totalorder %s4629_s29, %s4629_s29 }
 0x158   :  { %3702 = vmatprep.mubr.f32.mxu0 %v1851_v62  ;;  %v4419_v43 = vpop.f32.mrb[37].mxu0 }
 0x159   :  { %v2341_v44 = vpop.f32.mrb[38].mxu1  ;;  %p4636_p13 = por %p4635_p12, %p4634_p11 }
 0x15a   :  { %v4354_v45 = vpop.f32.mrb[39].mxu1 }
 0x15b   :  { %3703 = vmatmul.mubr.f32.gmra.mrb[56].mxu0 %v5068_v30  ;;  %v3412_v46 = vpop.f32.mrb[38].mxu0  ;;  %p4637_p0 = pnand %p4636_p13, %p4630_p10 }
 0x15c   :  { %3707 = vmatprep.mubr.f32.mxu0 %v1921_v28  ;;  %v4429_v47 = vpop.f32.mrb[39].mxu0 }
 0x15d   :  { %v2502_v48 = vpop.f32.mrb[40].mxu1 }
 0x15e   :  { %v4364_v49 = vpop.f32.mrb[41].mxu1  ;;  %4468 = vmatmul.mubr.f32.vlgmr.msra.gmra.mrb[56].mxu1 %v2502_v48 }
 0x15f   :  { %3708 = vmatmul.mubr.f32.gmra.mrb[58].mxu0 %v5076_v60  ;;  %4470 = vmatprep.mubr.f32.mxu1 %v2572_v18 }
 0x160   :  { %3712 = vmatprep.mubr.f32.mxu0 %v5080_v3 }
 0x161   :  { %v2642_v50 = vpop.f32.mrb[42].mxu1 }
 0x162   :  { %v4374_v51 = vpop.f32.mrb[43].mxu1  ;;  %4471 = vmatmul.mubr.f32.gmra.mrb[58].mxu1 %v2642_v50 }
 0x163   :  { %3713 = vmatmul.mubr.f32.gmra.mrb[60].mxu0 %v5070_v34  ;;  %4473 = vmatprep.mubr.f32.mxu1 %v2712_v22 }
 0x164   :  { %3717 = vmatprep.mubr.f32.mxu0 %v2061_v33 }
 0x165   :  { %v2782_v52 = vpop.f32.mrb[44].mxu1 }
 0x166   :  { %v4384_v30 = vpop.f32.mrb[45].mxu1  ;;  %4474 = vmatmul.mubr.f32.gmra.mrb[60].mxu1 %v2782_v52 }
 0x167   :  { %3718 = vmatmul.mubr.f32.gmra.mrb[62].mxu0 %v5078_v1  ;;  %4476 = vmatprep.mubr.f32.mxu1 %v2852_v26 }
 0x168   :  { %3722 = vmatprep.mubr.f32.mxu0 %v5084_v7 }
 0x169   :  { %v2922_v53 = vpop.f32.mrb[46].mxu1 }
 0x16a   :  { %v4394_v54 = vpop.f32.mrb[47].mxu1  ;;  %4477 = vmatmul.mubr.f32.gmra.mrb[62].mxu1 %v2922_v53 }
 0x16b   :  { %3723 = vmatmul.mubr.f32.gmra.mrb[64].mxu0 %v5072_v38  ;;  %4479 = vmatprep.mubr.f32.mxu1 %v2992_v31 }
 0x16c   :  { %3727 = vmatprep.mubr.f32.mxu0 %v2201_v39 }
 0x16d   :  { %v3062_v55 = vpop.f32.mrb[48].mxu1 }
 0x16e   :  { %v4404_v56 = vpop.f32.mrb[49].mxu1  ;;  %4480 = vmatmul.mubr.f32.gmra.mrb[64].mxu1 %v3062_v55 }
 0x16f   :  { %3728 = vmatmul.mubr.f32.gmra.mrb[66].mxu0 %v5082_v5  ;;  %4482 = vmatprep.mubr.f32.mxu1 %v3132_v36 }
 0x170   :  { %3732 = vmatprep.mubr.f32.mxu0 %v5088_v11 }
 0x171   :  { %v3202_v34 = vpop.f32.mrb[50].mxu1 }
 0x172   :  { %v4414_v57 = vpop.f32.mrb[51].mxu1  ;;  %4483 = vmatmul.mubr.f32.gmra.mrb[66].mxu1 %v3202_v34 }
 0x173   :  { %3733 = vmatmul.mubr.f32.gmra.mrb[68].mxu0 %v5074_v42  ;;  %4485 = vmatprep.mubr.f32.mxu1 %v3272_v41 }
 0x174   :  { %3737 = vmatprep.mubr.f32.mxu0 %v2341_v44 }
 0x175   :  { %v3342_v58 = vpop.f32.mrb[52].mxu1 }
 0x176   :  { %v4424_v59 = vpop.f32.mrb[53].mxu1  ;;  %4486 = vmatmul.mubr.f32.gmra.mrb[68].mxu1 %v3342_v58 }
 0x177   :  { %3738 = vmatmul.mubr.f32.gmra.mrb[70].mxu0 %v5086_v9  ;;  %4488 = vmatprep.mubr.f32.mxu1 %v3412_v46 }
 0x179   :  { %v3482_v38 = vpop.f32.mrb[54].mxu1 }
 0x17a   :  { %v4434_v60 = vpop.f32.mrb[55].mxu1  ;;  %4489 = vmatmul.mubr.f32.gmra.mrb[70].mxu1 %v3482_v38 }
 0x1f3   :  { %v4115_v61 = vpop.f32.mrb[40].mxu0 }
 0x1f4   :  { %v4116_v62 = vpop.f32.mrb[41].mxu0 }
 0x1f5   :  { %v4117_v63 = vadd.f32 %v4116_v62, %v4115_v61 }
 0x212   :  { %v4118_v1 = vpop.f32.mrb[42].mxu0 }
 0x213   :  { %v4119_v2 = vpop.f32.mrb[43].mxu0 }
 0x214   :  { %v4120_v3 = vadd.f32 %v4119_v2, %v4118_v1 }
 0x216   :  { %v4121_v4 = vpop.f32.mrb[44].mxu0 }
 0x217   :  { %v4122_v5 = vpop.f32.mrb[45].mxu0 }
 0x218   :  { %v4123_v42 = vadd.f32 %v4122_v5, %v4121_v4 }
 0x21a   :  { %v4124_v6 = vpop.f32.mrb[46].mxu0 }
 0x21b   :  { %v4125_v7 = vpop.f32.mrb[47].mxu0 }
 0x21c   :  { %v4126_v8 = vadd.f32 %v4125_v7, %v4124_v6 }
 0x21e   :  { %v4127_v10 = vpop.f32.mrb[48].mxu0 }
 0x21f   :  { %v4128_v11 = vpop.f32.mrb[49].mxu0 }
 0x220   :  { %v4129_v12 = vadd.f32 %v4128_v11, %v4127_v10 }
 0x222   :  { %v4130_v9 = vpop.f32.mrb[50].mxu0 }
 0x223   :  { %v4131_v13 = vpop.f32.mrb[51].mxu0 }
 0x224   :  { %v4132_v0 = vadd.f32 %v4131_v13, %v4130_v9 }
 0x226   :  { %v4133_v14 = vpop.f32.mrb[52].mxu0 }
 0x227   :  { %v4134_v15 = vpop.f32.mrb[53].mxu0 }
 0x228   :  { %v4135_v16 = vadd.f32 %v4134_v15, %v4133_v14 }
 0x22a   :  { %v4136_v17 = vpop.f32.mrb[54].mxu0 }
 0x22b   :  { %v4137_v18 = vpop.f32.mrb[55].mxu0 }
 0x22c   :  { %v4138_v19 = vadd.f32 %v4137_v18, %v4136_v17 }
 0x22e   :  { %v4139_v20 = vpop.f32.mrb[56].mxu0 }
 0x22f   :  { %v4140_v21 = vpop.f32.mrb[57].mxu0 }
 0x230   :  { %v4141_v22 = vadd.f32 %v4140_v21, %v4139_v20 }
 0x231   :  { %v4469_v23 = vpop.f32.mrb[56].mxu1 }
 0x232   :  { %v3815_v25 = vadd.f32 %v4469_v23, %v4120_v3  ;;  %v4142_v26 = vpop.f32.mrb[58].mxu0  ;;  %v3809_v27 = vpop.f32.mrb[57].mxu1 }
 0x233   :  { %v3810_v28 = vadd.f32 %v4117_v63, %v3809_v27  ;;  %v4143_v29 = vpop.f32.mrb[59].mxu0 }
 0x234   :  { %v3890_v31 = vadd.f32 %v5104_v24, %v3815_v25  ;;  %v4144_v32 = vadd.f32 %v4143_v29, %v4142_v26 }
 0x235   :  { %v3889_v33 = vadd.f32 %v5104_v24, %v3810_v28  ;;  %v4472_v35 = vpop.f32.mrb[58].mxu1 }
 0x236   :  { %3906 = vst [vmem:[#allocation9 + $0x8] sm:$0xff] %v3890_v31  ;;  %v3825_v36 = vadd.f32 %v4472_v35, %v4126_v8  ;;  %v4145_v37 = vpop.f32.mrb[60].mxu0  ;;  %v3819_v39 = vpop.f32.mrb[59].mxu1 }
 0x237   :  { %3905 = vst [vmem:[#allocation9] sm:$0xff] %v3889_v33  ;;  %v3820_v40 = vadd.f32 %v4123_v42, %v3819_v39  ;;  %v4146_v41 = vpop.f32.mrb[61].mxu0 }
 0x238   :  { %v3892_v43 = vadd.f32 %v5104_v24, %v3825_v36  ;;  %v4147_v44 = vadd.f32 %v4146_v41, %v4145_v37 }
 0x239   :  { %v3891_v45 = vadd.f32 %v5104_v24, %v3820_v40  ;;  %v4475_v46 = vpop.f32.mrb[60].mxu1 }
 0x23a   :  { %3908 = vst [vmem:[#allocation9 + $0x18] sm:$0xff] %v3892_v43  ;;  %v3835_v47 = vadd.f32 %v4475_v46, %v4132_v0  ;;  %v4148_v48 = vpop.f32.mrb[62].mxu0  ;;  %v3829_v49 = vpop.f32.mrb[61].mxu1 }
 0x23b   :  { %3907 = vst [vmem:[#allocation9 + $0x10] sm:$0xff] %v3891_v45  ;;  %v3830_v50 = vadd.f32 %v4129_v12, %v3829_v49  ;;  %v4149_v51 = vpop.f32.mrb[63].mxu0 }
 0x23c   :  { %v3894_v52 = vadd.f32 %v5104_v24, %v3835_v47  ;;  %v4150_v30 = vadd.f32 %v4149_v51, %v4148_v48 }
 0x23d   :  { %v3893_v53 = vadd.f32 %v5104_v24, %v3830_v50  ;;  %v4478_v54 = vpop.f32.mrb[62].mxu1 }
 0x23e   :  { %3910 = vst [vmem:[#allocation9 + $0x28] sm:$0xff] %v3894_v52  ;;  %v3845_v55 = vadd.f32 %v4478_v54, %v4138_v19  ;;  %v4151_v56 = vpop.f32.mrb[64].mxu0  ;;  %v3839_v34 = vpop.f32.mrb[63].mxu1 }
 0x23f   :  { %3909 = vst [vmem:[#allocation9 + $0x20] sm:$0xff] %v3893_v53  ;;  %v3840_v57 = vadd.f32 %v4135_v16, %v3839_v34  ;;  %v4152_v58 = vpop.f32.mrb[65].mxu0 }
 0x240   :  { %v3896_v59 = vadd.f32 %v5104_v24, %v3845_v55  ;;  %v4153_v38 = vadd.f32 %v4152_v58, %v4151_v56 }
 0x241   :  { %v3895_v60 = vadd.f32 %v5104_v24, %v3840_v57  ;;  %v4481_v61 = vpop.f32.mrb[64].mxu1 }
 0x242   :  { %3912 = vst [vmem:[#allocation9 + $0x38] sm:$0xff] %v3896_v59  ;;  %v3855_v62 = vadd.f32 %v4481_v61, %v4144_v32  ;;  %v4154_v63 = vpop.f32.mrb[66].mxu0  ;;  %v3849_v1 = vpop.f32.mrb[65].mxu1 }
 0x243   :  { %3911 = vst [vmem:[#allocation9 + $0x30] sm:$0xff] %v3895_v60  ;;  %v3850_v2 = vadd.f32 %v4141_v22, %v3849_v1  ;;  %v4155_v3 = vpop.f32.mrb[67].mxu0 }
 0x244   :  { %v3898_v4 = vadd.f32 %v5104_v24, %v3855_v62  ;;  %v4156_v5 = vadd.f32 %v4155_v3, %v4154_v63 }
 0x245   :  { %v3897_v42 = vadd.f32 %v5104_v24, %v3850_v2  ;;  %v4484_v6 = vpop.f32.mrb[66].mxu1 }
 0x246   :  { %3914 = vst [vmem:[#allocation9 + $0x48] sm:$0xff] %v3898_v4  ;;  %v3865_v7 = vadd.f32 %v4484_v6, %v4150_v30  ;;  %v4157_v8 = vpop.f32.mrb[68].mxu0  ;;  %v3859_v10 = vpop.f32.mrb[67].mxu1 }
 0x247   :  { %3913 = vst [vmem:[#allocation9 + $0x40] sm:$0xff] %v3897_v42  ;;  %v3860_v11 = vadd.f32 %v4147_v44, %v3859_v10  ;;  %v4158_v12 = vpop.f32.mrb[69].mxu0 }
 0x248   :  { %v3900_v9 = vadd.f32 %v5104_v24, %v3865_v7  ;;  %v4159_v13 = vadd.f32 %v4158_v12, %v4157_v8 }
 0x249   :  { %v3899_v0 = vadd.f32 %v5104_v24, %v3860_v11  ;;  %v4487_v14 = vpop.f32.mrb[68].mxu1 }
 0x24a   :  { %3916 = vst [vmem:[#allocation9 + $0x58] sm:$0xff] %v3900_v9  ;;  %v3875_v15 = vadd.f32 %v4487_v14, %v4156_v5  ;;  %v4160_v16 = vpop.f32.mrb[70].mxu0  ;;  %v3869_v17 = vpop.f32.mrb[69].mxu1 }
 0x24b   :  { %3915 = vst [vmem:[#allocation9 + $0x50] sm:$0xff] %v3899_v0  ;;  %v3870_v18 = vadd.f32 %v4153_v38, %v3869_v17  ;;  %v4161_v19 = vpop.f32.mrb[71].mxu0 }
 0x24c   :  { %v3902_v20 = vadd.f32 %v5104_v24, %v3875_v15  ;;  %v4162_v21 = vadd.f32 %v4161_v19, %v4160_v16 }
 0x24d   :  { %v3901_v22 = vadd.f32 %v5104_v24, %v3870_v18  ;;  %v4490_v23 = vpop.f32.mrb[70].mxu1 }
 0x24e   :  { %3918 = vst [vmem:[#allocation9 + $0x68] sm:$0xff] %v3902_v20  ;;  %v3885_v25 = vadd.f32 %v4490_v23, %v4162_v21  ;;  %v3879_v26 = vpop.f32.mrb[71].mxu1 }
 0x24f   :  { %3917 = vst [vmem:[#allocation9 + $0x60] sm:$0xff] %v3901_v22  ;;  %v3880_v27 = vadd.f32 %v4159_v13, %v3879_v26 }
 0x250   :  { %v3904_v28 = vadd.f32 %v5104_v24, %v3885_v25 }
 0x251   :  { %v3903_v29 = vadd.f32 %v5104_v24, %v3880_v27 }
 0x252   :  { %3920 = vst [vmem:[#allocation9 + $0x78] sm:$0xff] %v3904_v28 }
 0x253   :  { %3919 = vst [vmem:[#allocation9 + $0x70] sm:$0xff] %v3903_v29 }
 0x254   :  { %4640 = shalt.err (!%p4637_p0)
}
 0x255   :  { %s4641_s6 = scalar_lea.hbm %s5141_s4, 2048 }
 0x256   :  { %p4642_p1 = scmp.ne.s32.totalorder %s5141_s4, %s4641_s6  ;;  %p4645_p2 = scmp.lt.u32.totalorder %s4641_s6, %s5141_s4 }
 0x258   :  { %p4647_p3 = pnand %p4645_p2, %p4642_p1 }
 0x25a   :  { %4650 = shalt.err (!%p4647_p3)
}
 0x25b   :  { %3932 = dma.vmem_to_hbm [thread:$0]  %s3927_s26, 2048, %s5141_s4, [#allocation5], %s4659_s27, %s4659_s27, %s4660_s28  }
 0x25c   :  { %4655 = dma.done.wait [#allocation5], 2048  }
 0x25d   :  { %4656 = vsyncadd [#allocation5], 4294965248 }
 0x25e   :  { %3936 = vsyncpa [#allocation4], 1 }
 0x25f   :  { %3937 = vsyncpa [#allocation7], 1 }
 0x260   :  { %3938 = vsyncpa [#allocation5], 1 }

</bundles_post_ra>
